<compile_context>
chip_gen: v7x
topology: tpu7x:2x2x1
jax: 0.10.0
libtpu: 0.0.40
codegen_flags: <defaults>
</compile_context>

<pallas_src>
import functools
import math

import jax
import jax.numpy as jnp
from jax.experimental import pallas as pl
from jax.experimental.pallas import tpu as pltpu


def _round_up(n, m):
    return ((n + m - 1) // m) * m


def _cdiv(a, b):
    return -(-a // b)


def hfpca_kernel(x_ref, w1_ref, b1_ref, wc_ref, bc_ref, w2_ref, b2_ref, o_ref,
                 *, add_residual=True):
    # x:(TM,Dp) w1:(Dp,Ap) b1:(1,Ap) wc:(Ap,Ap) bc:(1,Ap) w2:(Ap,Dp) b2:(1,Dp)
    x = x_ref[...]
    wdt = w1_ref.dtype
    # Per-head upsample as one block-diagonal matmul (lane-dense, f32 accumulation).
    u = jnp.dot(x.astype(wdt), w1_ref[...],
                preferred_element_type=jnp.float32) + b1_ref[...]
    # Cross-head linear with internal residual, then ReLU.
    v = u + jnp.dot(u.astype(wdt), wc_ref[...],
                    preferred_element_type=jnp.float32) + bc_ref[...]
    v = jnp.maximum(v, 0.0)
    # Per-head downsample as one block-diagonal matmul.
    y = jnp.dot(v.astype(wdt), w2_ref[...],
                preferred_element_type=jnp.float32) + b2_ref[...]
    # TODO(synk): dropout is identity at inference; optional external layernorm not fused.
    out = x.astype(jnp.float32) + y if add_residual else y
    o_ref[...] = out.astype(o_ref.dtype)


def _block_diag(w):
    """(Hh, din, dout) -> block-diagonal (Hh*din, Hh*dout), head-major layout."""
    hh, din, dout = w.shape
    eye = jnp.eye(hh, dtype=w.dtype)
    return jnp.einsum('hij,hg->higj', w, eye).reshape(hh * din, hh * dout)


def _vmem_budget_and_limit():
    """(tile budget, vmem_limit_bytes), gated on the chip's physical VMEM."""
    phys = None
    try:
        phys = int(pltpu.get_tpu_info().vmem_capacity_bytes)
    except Exception:
        phys = None
    if phys is not None and phys >= 96 * 1024 * 1024:      # v5e / v6e: 128 MiB physical
        return 88 * 1024 * 1024, 100 * 1024 * 1024
    return 36 * 1024 * 1024, 48 * 1024 * 1024              # v7x-safe (64 MiB physical)


def _choose_tile_m(m, d_p, a_p, x_bytes, w_bytes, budget_bytes, weight_buffers):
    """Row-tile size (multiple of 8) and tile count fitting the VMEM budget."""
    # Resident weights/biases (weight_buffers = 1 when constants are single-buffered).
    weight_cost = weight_buffers * ((d_p * a_p + a_p * a_p + a_p * d_p) * w_bytes
                                    + (2 * a_p + d_p) * 4)
    # Per-row: double-buffered x/out tiles, f32 u & v, plus compiler temporaries
    # (low-precision staging casts for the three matmuls, pre-cast output, slack).
    per_row = (2 * d_p * x_bytes            # x tile, 2 buffers
               + 2 * d_p * x_bytes          # out tile, 2 buffers
               + 2 * a_p * 4                # u, v in f32
               + (2 * a_p + d_p) * w_bytes  # staging casts for MXU operands
               + a_p * 4)                   # slack for fusion temporaries
    tm = (budget_bytes - weight_cost) // max(per_row, 1)
    tm = int(max(8, min(tm, 1024)))
    # Keep >= ~4 row tiles so both v7x TensorCores get work, but never shrink
    # tiles below 256 rows just for core balance.
    tm = min(tm, max(256, _round_up(_cdiv(m, 4), 8)))
    tm = max(8, (tm // 8) * 8)
    # Rebalance so row padding is < 8 rows per tile instead of up to a dead tile.
    ntiles = _cdiv(m, tm)
    tm = _round_up(_cdiv(m, ntiles), 8)
    return tm, ntiles


def hfpca_forward(x, w1, b1, wc, bc, w2, b2, *, weight_dtype=jnp.bfloat16, residual=True):
    """x: (..., D) with D = Hh*Dh.  w1:(Hh,Dh,Ah) b1:(Hh,Ah) wc:(A,A) bc:(A,)
    w2:(Hh,Ah,Dh) b2:(Hh,Dh). Weights stored (in, out). Returns x.shape / x.dtype."""
    orig_shape = x.shape
    D = orig_shape[-1]
    Hh, Dh, Ah = w1.shape
    assert D == Hh * Dh, "input_size must equal adapter_heads * d_model_heads_size"
    A = Hh * Ah
    M = int(math.prod(orig_shape[:-1]))

    w_dt = jnp.dtype(weight_dtype) if weight_dtype is not None else jnp.dtype(x.dtype)
    # TODO(synk): for very large Hh*A (block-diag up/down weights >> VMEM) a per-head
    # batched-matmul restructure would be needed; block-diag is kept for lane-density.
    w1bd = _block_diag(w1).astype(w_dt)          # (D, A)
    w2bd = _block_diag(w2).astype(w_dt)          # (A, D)
    wcm = wc.astype(w_dt)                        # (A, A)
    b1f = b1.reshape(1, A).astype(jnp.float32)
    bcf = bc.reshape(1, A).astype(jnp.float32)
    b2f = b2.reshape(1, D).astype(jnp.float32)

    Dp = _round_up(D, 128)
    Ap = _round_up(A, 128)
    x_bytes = jnp.dtype(x.dtype).itemsize
    w_bytes = w_dt.itemsize
    budget, vmem_limit = _vmem_budget_and_limit()

    def pad2(a, rows, cols):
        if a.shape == (rows, cols):
            return a
        return jnp.pad(a, ((0, rows - a.shape[0]), (0, cols - a.shape[1])))

    # Rows are never padded (partial last tile handled by boundary-block masking);
    # feature dims are zero-padded only when genuinely unaligned, which is exactly
    # neutral (zero weight rows/cols + zero bias keep padded lanes at zero).
    x2d = x.reshape(M, D)
    xp = x2d if Dp == D else jnp.pad(x2d, ((0, 0), (0, Dp - D)))
    w1p = pad2(w1bd, Dp, Ap)
    wcp = pad2(wcm, Ap, Ap)
    w2p = pad2(w2bd, Ap, Dp)
    b1p = pad2(b1f, 1, Ap)
    bcp = pad2(bcf, 1, Ap)
    b2p = pad2(b2f, 1, Dp)

    kernel = functools.partial(hfpca_kernel, add_residual=bool(residual))

    def run(single_buffer_weights):
        tm, ntiles = _choose_tile_m(M, Dp, Ap, x_bytes, w_bytes, budget,
                                    weight_buffers=1 if single_buffer_weights else 2)
        rows = ntiles * tm
        flops = 2 * rows * Ap * (2 * Dp + Ap) + 4 * rows * (Ap + Dp)
        bytes_accessed = (2 * M * Dp * x_bytes
                          + (Dp * Ap + Ap * Ap + Ap * Dp) * w_bytes
                          + (2 * Ap + Dp) * 4)

        def const_spec(shape):
            ndim = len(shape)
            imap = lambda i: (0,) * ndim
            if single_buffer_weights:
                # Constant operands gain nothing from double-buffering; Buffered(1)
                # halves their resident VMEM footprint.
                return pl.BlockSpec(shape, imap, pipeline_mode=pl.Buffered(1))
            return pl.BlockSpec(shape, imap)

        return pl.pallas_call(
            kernel,
            out_shape=jax.ShapeDtypeStruct((M, Dp), x.dtype),
            grid_spec=pltpu.PrefetchScalarGridSpec(
                num_scalar_prefetch=0,
                grid=(ntiles,),
                in_specs=[
                    pl.BlockSpec((tm, Dp), lambda i: (i, 0)),   # x row tile (pipelined)
                    const_spec((Dp, Ap)),                       # block-diag upsample W1
                    const_spec((1, Ap)),                        # b1
                    const_spec((Ap, Ap)),                       # cross_linear Wc
                    const_spec((1, Ap)),                        # bc
                    const_spec((Ap, Dp)),                       # block-diag downsample W2
                    const_spec((1, Dp)),                        # b2
                ],
                out_specs=pl.BlockSpec((tm, Dp), lambda i: (i, 0)),
            ),
            compiler_params=pltpu.CompilerParams(
                dimension_semantics=("parallel",),              # row tiles independent
                vmem_limit_bytes=vmem_limit,
            ),
            cost_estimate=pl.CostEstimate(
                flops=int(flops), transcendentals=0,
                bytes_accessed=int(bytes_accessed)),
        )(xp, w1p, b1p, wcp, bcp, w2p, b2p)

    try:
        out2d = run(single_buffer_weights=True)
    except Exception:
        # Builds that reject pl.Buffered(1) on pallas_call BlockSpecs fall back to
        # default double-buffered constants (correct; just uses more VMEM).
        out2d = run(single_buffer_weights=False)

    if Dp != D:
        out2d = out2d[:, :D]
    return out2d.reshape(orig_shape)


def hfpca_reference(x, w1, b1, wc, bc, w2, b2):
    """Pure-JAX reference mirroring the PyTorch per-head structure."""
    lead = x.shape[:-1]
    Hh, Dh, Ah = w1.shape
    xh = x.reshape(lead + (Hh, Dh))
    u = jnp.einsum('...hd,hda->...ha', xh, w1) + b1
    uf = u.reshape((-1, Hh * Ah))
    v = jnp.maximum(uf + uf @ wc + bc, 0.0)
    vh = v.reshape(lead + (Hh, Ah))
    y = jnp.einsum('...ha,had->...hd', vh, w2) + b2
    return x + y.reshape(x.shape)


def init_params(key, input_size, adapter_heads, adapter_heads_size, dtype=jnp.float32):
    """PyTorch-Linear-style init (uniform +/- 1/sqrt(fan_in)); weights stored (in, out)."""
    assert input_size % adapter_heads == 0
    Dh = input_size // adapter_heads
    A = adapter_heads * adapter_heads_size
    ks = jax.random.split(key, 6)
    bu = 1.0 / (Dh ** 0.5)
    bd = 1.0 / (adapter_heads_size ** 0.5)
    bc_ = 1.0 / (A ** 0.5)
    w1 = jax.random.uniform(ks[0], (adapter_heads, Dh, adapter_heads_size), dtype, -bu, bu)
    b1 = jax.random.uniform(ks[1], (adapter_heads, adapter_heads_size), dtype, -bu, bu)
    wc = jax.random.uniform(ks[2], (A, A), dtype, -bc_, bc_)
    bc = jax.random.uniform(ks[3], (A,), dtype, -bc_, bc_)
    w2 = jax.random.uniform(ks[4], (adapter_heads, adapter_heads_size, Dh), dtype, -bd, bd)
    b2 = jax.random.uniform(ks[5], (adapter_heads, Dh), dtype, -bd, bd)
    return w1, b1, wc, bc, w2, b2


if __name__ == "__main__":
    key = jax.random.PRNGKey(0)
    k_x, k_p, k_x2 = jax.random.split(key, 3)

    # Case 1: unaligned D (feature-pad path), f32 activations, default bf16 weights.
    batch, seq = 2, 8
    input_size, adapter_heads, adapter_heads_size = 64, 4, 16   # Dh=16, A=64
    x = jax.random.normal(k_x, (batch, seq, input_size), jnp.float32)
    params = init_params(k_p, input_size, adapter_heads, adapter_heads_size)
    ref = hfpca_reference(x, *params)

    out = jax.block_until_ready(hfpca_forward(x, *params))          # bf16-weight default
    assert out.shape == x.shape
    assert jnp.allclose(out, ref, atol=5e-2, rtol=5e-2), "bf16-weight path mismatch"

    out_f32 = jax.block_until_ready(
        hfpca_forward(x, *params, weight_dtype=jnp.float32))        # exact f32 path
    assert jnp.allclose(out_f32, ref, atol=1e-4, rtol=1e-4), "f32 path mismatch"

    # Case 2: lane-aligned D (no pad / no slice), bf16 activations, multi-tile grid
    # with a partial last row tile (M=300 not divisible by the chosen tile).
    b2_, s2_, D2, Hh2, Ah2 = 3, 100, 128, 4, 32                    # Dh=32, A=128
    params2 = init_params(k_p, D2, Hh2, Ah2)
    x2 = jax.random.normal(k_x2, (b2_, s2_, D2), jnp.float32).astype(jnp.bfloat16)
    out2 = jax.block_until_ready(hfpca_forward(x2, *params2))
    ref2 = hfpca_reference(x2.astype(jnp.float32), *params2)
    assert out2.shape == x2.shape and out2.dtype == jnp.bfloat16
    assert jnp.allclose(out2.astype(jnp.float32), ref2, atol=1e-1, rtol=1e-1), \
        "bf16-activation path mismatch"

    print("KERNEL_OK")
</pallas_src>

<mosaic_0001>
module attributes {stable_mosaic.version = 11 : i64} {
  func.func @hfpca_kernel(%arg0: i32, %arg1: memref<16x128xf32, #tpu.memory_space<vmem>>, %arg2: memref<128x128xbf16, #tpu.memory_space<vmem>>, %arg3: memref<1x128xf32, #tpu.memory_space<vmem>>, %arg4: memref<128x128xbf16, #tpu.memory_space<vmem>>, %arg5: memref<1x128xf32, #tpu.memory_space<vmem>>, %arg6: memref<128x128xbf16, #tpu.memory_space<vmem>>, %arg7: memref<1x128xf32, #tpu.memory_space<vmem>>, %arg8: memref<16x128xf32, #tpu.memory_space<vmem>>) attributes {dimension_semantics = [#tpu.dimension_semantics<parallel>], iteration_bounds = array<i64: 1>, scalar_prefetch = 0 : i64, scratch_operands = 0 : i64, tpu.core_type = #tpu.core_type<tc>, window_params = [{transform_indices = @transform_0, window_bounds = array<i64: 16, 128>}, {pipeline_mode = #tpu.pipeline_mode<synchronous>, transform_indices = @transform_1, window_bounds = array<i64: 128, 128>}, {pipeline_mode = #tpu.pipeline_mode<synchronous>, transform_indices = @transform_2, window_bounds = array<i64: 1, 128>}, {pipeline_mode = #tpu.pipeline_mode<synchronous>, transform_indices = @transform_3, window_bounds = array<i64: 128, 128>}, {pipeline_mode = #tpu.pipeline_mode<synchronous>, transform_indices = @transform_4, window_bounds = array<i64: 1, 128>}, {pipeline_mode = #tpu.pipeline_mode<synchronous>, transform_indices = @transform_5, window_bounds = array<i64: 128, 128>}, {pipeline_mode = #tpu.pipeline_mode<synchronous>, transform_indices = @transform_6, window_bounds = array<i64: 1, 128>}, {transform_indices = @transform_7, window_bounds = array<i64: 16, 128>}]} {
    %c0 = arith.constant 0 : index
    %c0_0 = arith.constant 0 : index
    %0 = vector.load %arg1[%c0, %c0_0] : memref<16x128xf32, #tpu.memory_space<vmem>>, vector<16x128xf32>
    %1 = arith.truncf %0 : vector<16x128xf32> to vector<16x128xbf16>
    %c0_1 = arith.constant 0 : index
    %c0_2 = arith.constant 0 : index
    %2 = vector.load %arg2[%c0_1, %c0_2] : memref<128x128xbf16, #tpu.memory_space<vmem>>, vector<128x128xbf16>
    %cst = arith.constant dense<0.000000e+00> : vector<16x128xf32>
    %3 = tpu.matmul %1, %2, %cst {dimension_numbers = #tpu.dot_dimension_numbers<[1], [0], [0], [1], [0, 0, 1, 1], [], []>} : vector<16x128xbf16>, vector<128x128xbf16>, vector<16x128xf32> -> vector<16x128xf32>
    %c0_3 = arith.constant 0 : index
    %c0_4 = arith.constant 0 : index
    %4 = vector.load %arg3[%c0_3, %c0_4] : memref<1x128xf32, #tpu.memory_space<vmem>>, vector<1x128xf32>
    %5 = vector.broadcast %4 : vector<1x128xf32> to vector<16x128xf32>
    %6 = arith.addf %3, %5 : vector<16x128xf32>
    %7 = arith.truncf %6 : vector<16x128xf32> to vector<16x128xbf16>
    %c0_5 = arith.constant 0 : index
    %c0_6 = arith.constant 0 : index
    %8 = vector.load %arg4[%c0_5, %c0_6] : memref<128x128xbf16, #tpu.memory_space<vmem>>, vector<128x128xbf16>
    %cst_7 = arith.constant dense<0.000000e+00> : vector<16x128xf32>
    %9 = tpu.matmul %7, %8, %cst_7 {dimension_numbers = #tpu.dot_dimension_numbers<[1], [0], [0], [1], [0, 0, 1, 1], [], []>} : vector<16x128xbf16>, vector<128x128xbf16>, vector<16x128xf32> -> vector<16x128xf32>
    %10 = arith.addf %6, %9 : vector<16x128xf32>
    %c0_8 = arith.constant 0 : index
    %c0_9 = arith.constant 0 : index
    %11 = vector.load %arg5[%c0_8, %c0_9] : memref<1x128xf32, #tpu.memory_space<vmem>>, vector<1x128xf32>
    %12 = vector.broadcast %11 : vector<1x128xf32> to vector<16x128xf32>
    %13 = arith.addf %10, %12 : vector<16x128xf32>
    %cst_10 = arith.constant 0.000000e+00 : f32
    %14 = vector.broadcast %cst_10 : f32 to vector<16x128xf32>
    %15 = arith.maximumf %13, %14 : vector<16x128xf32>
    %16 = arith.truncf %15 : vector<16x128xf32> to vector<16x128xbf16>
    %c0_11 = arith.constant 0 : index
    %c0_12 = arith.constant 0 : index
    %17 = vector.load %arg6[%c0_11, %c0_12] : memref<128x128xbf16, #tpu.memory_space<vmem>>, vector<128x128xbf16>
    %cst_13 = arith.constant dense<0.000000e+00> : vector<16x128xf32>
    %18 = tpu.matmul %16, %17, %cst_13 {dimension_numbers = #tpu.dot_dimension_numbers<[1], [0], [0], [1], [0, 0, 1, 1], [], []>} : vector<16x128xbf16>, vector<128x128xbf16>, vector<16x128xf32> -> vector<16x128xf32>
    %c0_14 = arith.constant 0 : index
    %c0_15 = arith.constant 0 : index
    %19 = vector.load %arg7[%c0_14, %c0_15] : memref<1x128xf32, #tpu.memory_space<vmem>>, vector<1x128xf32>
    %20 = vector.broadcast %19 : vector<1x128xf32> to vector<16x128xf32>
    %21 = arith.addf %18, %20 : vector<16x128xf32>
    %22 = arith.addf %0, %21 : vector<16x128xf32>
    %c0_16 = arith.constant 0 : index
    %c0_17 = arith.constant 0 : index
    %23 = vector.load %arg8[%c0_16, %c0_17] : memref<16x128xf32, #tpu.memory_space<vmem>>, vector<16x128xf32>
    tpu.vector_store %arg8[%c0_16, %c0_17], %22 {strides = array<i32>} : memref<16x128xf32, #tpu.memory_space<vmem>>, vector<16x128xf32>,
    return
  }
  func.func @transform_0(%arg0: i32) -> (i32, i32) {
    %c0_i32 = arith.constant 0 : i32
    %c0_i32_0 = arith.constant 0 : i32
    return %arg0, %c0_i32 : i32, i32
  }
  func.func @transform_1(%arg0: i32) -> (i32, i32) {
    %c0_i32 = arith.constant 0 : i32
    %c0_i32_0 = arith.constant 0 : i32
    %c0_i32_1 = arith.constant 0 : i32
    return %c0_i32, %c0_i32_0 : i32, i32
  }
  func.func @transform_2(%arg0: i32) -> (i32, i32) {
    %c0_i32 = arith.constant 0 : i32
    %c0_i32_0 = arith.constant 0 : i32
    %c0_i32_1 = arith.constant 0 : i32
    return %c0_i32, %c0_i32_0 : i32, i32
  }
  func.func @transform_3(%arg0: i32) -> (i32, i32) {
    %c0_i32 = arith.constant 0 : i32
    %c0_i32_0 = arith.constant 0 : i32
    %c0_i32_1 = arith.constant 0 : i32
    return %c0_i32, %c0_i32_0 : i32, i32
  }
  func.func @transform_4(%arg0: i32) -> (i32, i32) {
    %c0_i32 = arith.constant 0 : i32
    %c0_i32_0 = arith.constant 0 : i32
    %c0_i32_1 = arith.constant 0 : i32
    return %c0_i32, %c0_i32_0 : i32, i32
  }
  func.func @transform_5(%arg0: i32) -> (i32, i32) {
    %c0_i32 = arith.constant 0 : i32
    %c0_i32_0 = arith.constant 0 : i32
    %c0_i32_1 = arith.constant 0 : i32
    return %c0_i32, %c0_i32_0 : i32, i32
  }
  func.func @transform_6(%arg0: i32) -> (i32, i32) {
    %c0_i32 = arith.constant 0 : i32
    %c0_i32_0 = arith.constant 0 : i32
    %c0_i32_1 = arith.constant 0 : i32
    return %c0_i32, %c0_i32_0 : i32, i32
  }
  func.func @transform_7(%arg0: i32) -> (i32, i32) {
    %c0_i32 = arith.constant 0 : i32
    %c0_i32_0 = arith.constant 0 : i32
    return %arg0, %c0_i32 : i32, i32
  }
}

module attributes {stable_mosaic.version = 11 : i64} {
  func.func @hfpca_kernel(%arg0: i32, %arg1: memref<16x128xf32, #tpu.memory_space<vmem>>, %arg2: memref<128x128xbf16, #tpu.memory_space<vmem>>, %arg3: memref<1x128xf32, #tpu.memory_space<vmem>>, %arg4: memref<128x128xbf16, #tpu.memory_space<vmem>>, %arg5: memref<1x128xf32, #tpu.memory_space<vmem>>, %arg6: memref<128x128xbf16, #tpu.memory_space<vmem>>, %arg7: memref<1x128xf32, #tpu.memory_space<vmem>>, %arg8: memref<16x128xf32, #tpu.memory_space<vmem>>) attributes {dimension_semantics = [#tpu.dimension_semantics<parallel>], iteration_bounds = array<i64: 1>, scalar_prefetch = 0 : i64, scratch_operands = 0 : i64, tpu.core_type = #tpu.core_type<tc>, window_params = [{transform_indices = @transform_0, window_bounds = array<i64: 16, 128>}, {pipeline_mode = #tpu.pipeline_mode<synchronous>, transform_indices = @transform_1, window_bounds = array<i64: 128, 128>}, {pipeline_mode = #tpu.pipeline_mode<synchronous>, transform_indices = @transform_2, window_bounds = array<i64: 1, 128>}, {pipeline_mode = #tpu.pipeline_mode<synchronous>, transform_indices = @transform_3, window_bounds = array<i64: 128, 128>}, {pipeline_mode = #tpu.pipeline_mode<synchronous>, transform_indices = @transform_4, window_bounds = array<i64: 1, 128>}, {pipeline_mode = #tpu.pipeline_mode<synchronous>, transform_indices = @transform_5, window_bounds = array<i64: 128, 128>}, {pipeline_mode = #tpu.pipeline_mode<synchronous>, transform_indices = @transform_6, window_bounds = array<i64: 1, 128>}, {transform_indices = @transform_7, window_bounds = array<i64: 16, 128>}]} {
    %c0 = arith.constant 0 : index
    %c0_0 = arith.constant 0 : index
    %0 = vector.load %arg1[%c0, %c0_0] : memref<16x128xf32, #tpu.memory_space<vmem>>, vector<16x128xf32>
    %1 = arith.truncf %0 : vector<16x128xf32> to vector<16x128xbf16>
    %c0_1 = arith.constant 0 : index
    %c0_2 = arith.constant 0 : index
    %2 = vector.load %arg2[%c0_1, %c0_2] : memref<128x128xbf16, #tpu.memory_space<vmem>>, vector<128x128xbf16>
    %cst = arith.constant dense<0.000000e+00> : vector<16x128xf32>
    %3 = tpu.matmul %1, %2, %cst {dimension_numbers = #tpu.dot_dimension_numbers<[1], [0], [0], [1], [0, 0, 1, 1], [], []>} : vector<16x128xbf16>, vector<128x128xbf16>, vector<16x128xf32> -> vector<16x128xf32>
    %c0_3 = arith.constant 0 : index
    %c0_4 = arith.constant 0 : index
    %4 = vector.load %arg3[%c0_3, %c0_4] : memref<1x128xf32, #tpu.memory_space<vmem>>, vector<1x128xf32>
    %5 = vector.broadcast %4 : vector<1x128xf32> to vector<16x128xf32>
    %6 = arith.addf %3, %5 : vector<16x128xf32>
    %7 = arith.truncf %6 : vector<16x128xf32> to vector<16x128xbf16>
    %c0_5 = arith.constant 0 : index
    %c0_6 = arith.constant 0 : index
    %8 = vector.load %arg4[%c0_5, %c0_6] : memref<128x128xbf16, #tpu.memory_space<vmem>>, vector<128x128xbf16>
    %cst_7 = arith.constant dense<0.000000e+00> : vector<16x128xf32>
    %9 = tpu.matmul %7, %8, %cst_7 {dimension_numbers = #tpu.dot_dimension_numbers<[1], [0], [0], [1], [0, 0, 1, 1], [], []>} : vector<16x128xbf16>, vector<128x128xbf16>, vector<16x128xf32> -> vector<16x128xf32>
    %10 = arith.addf %6, %9 : vector<16x128xf32>
    %c0_8 = arith.constant 0 : index
    %c0_9 = arith.constant 0 : index
    %11 = vector.load %arg5[%c0_8, %c0_9] : memref<1x128xf32, #tpu.memory_space<vmem>>, vector<1x128xf32>
    %12 = vector.broadcast %11 : vector<1x128xf32> to vector<16x128xf32>
    %13 = arith.addf %10, %12 : vector<16x128xf32>
    %cst_10 = arith.constant 0.000000e+00 : f32
    %14 = vector.broadcast %cst_10 : f32 to vector<16x128xf32>
    %15 = arith.maximumf %13, %14 : vector<16x128xf32>
    %16 = arith.truncf %15 : vector<16x128xf32> to vector<16x128xbf16>
    %c0_11 = arith.constant 0 : index
    %c0_12 = arith.constant 0 : index
    %17 = vector.load %arg6[%c0_11, %c0_12] : memref<128x128xbf16, #tpu.memory_space<vmem>>, vector<128x128xbf16>
    %cst_13 = arith.constant dense<0.000000e+00> : vector<16x128xf32>
    %18 = tpu.matmul %16, %17, %cst_13 {dimension_numbers = #tpu.dot_dimension_numbers<[1], [0], [0], [1], [0, 0, 1, 1], [], []>} : vector<16x128xbf16>, vector<128x128xbf16>, vector<16x128xf32> -> vector<16x128xf32>
    %c0_14 = arith.constant 0 : index
    %c0_15 = arith.constant 0 : index
    %19 = vector.load %arg7[%c0_14, %c0_15] : memref<1x128xf32, #tpu.memory_space<vmem>>, vector<1x128xf32>
    %20 = vector.broadcast %19 : vector<1x128xf32> to vector<16x128xf32>
    %21 = arith.addf %18, %20 : vector<16x128xf32>
    %22 = arith.addf %0, %21 : vector<16x128xf32>
    %c0_16 = arith.constant 0 : index
    %c0_17 = arith.constant 0 : index
    %23 = vector.load %arg8[%c0_16, %c0_17] : memref<16x128xf32, #tpu.memory_space<vmem>>, vector<16x128xf32>
    tpu.vector_store %arg8[%c0_16, %c0_17], %22 {strides = array<i32>} : memref<16x128xf32, #tpu.memory_space<vmem>>, vector<16x128xf32>,
    return
  }
  func.func @transform_0(%arg0: i32) -> (i32, i32) {
    %c0_i32 = arith.constant 0 : i32
    %c0_i32_0 = arith.constant 0 : i32
    return %arg0, %c0_i32 : i32, i32
  }
  func.func @transform_1(%arg0: i32) -> (i32, i32) {
    %c0_i32 = arith.constant 0 : i32
    %c0_i32_0 = arith.constant 0 : i32
    %c0_i32_1 = arith.constant 0 : i32
    return %c0_i32, %c0_i32_0 : i32, i32
  }
  func.func @transform_2(%arg0: i32) -> (i32, i32) {
    %c0_i32 = arith.constant 0 : i32
    %c0_i32_0 = arith.constant 0 : i32
    %c0_i32_1 = arith.constant 0 : i32
    return %c0_i32, %c0_i32_0 : i32, i32
  }
  func.func @transform_3(%arg0: i32) -> (i32, i32) {
    %c0_i32 = arith.constant 0 : i32
    %c0_i32_0 = arith.constant 0 : i32
    %c0_i32_1 = arith.constant 0 : i32
    return %c0_i32, %c0_i32_0 : i32, i32
  }
  func.func @transform_4(%arg0: i32) -> (i32, i32) {
    %c0_i32 = arith.constant 0 : i32
    %c0_i32_0 = arith.constant 0 : i32
    %c0_i32_1 = arith.constant 0 : i32
    return %c0_i32, %c0_i32_0 : i32, i32
  }
  func.func @transform_5(%arg0: i32) -> (i32, i32) {
    %c0_i32 = arith.constant 0 : i32
    %c0_i32_0 = arith.constant 0 : i32
    %c0_i32_1 = arith.constant 0 : i32
    return %c0_i32, %c0_i32_0 : i32, i32
  }
  func.func @transform_6(%arg0: i32) -> (i32, i32) {
    %c0_i32 = arith.constant 0 : i32
    %c0_i32_0 = arith.constant 0 : i32
    %c0_i32_1 = arith.constant 0 : i32
    return %c0_i32, %c0_i32_0 : i32, i32
  }
  func.func @transform_7(%arg0: i32) -> (i32, i32) {
    %c0_i32 = arith.constant 0 : i32
    %c0_i32_0 = arith.constant 0 : i32
    return %arg0, %c0_i32 : i32, i32
  }
}

</mosaic_0001>

<bundles_post_ra>
// kernel: tpu_custom_call.1
= control target key start
LH: loop header
LB: loop body
LE: loop exit
PB: predicated region body
PF: predicated region fallthrough
CT: control target
= control target key end

     0   :  { %12 = vsyncpa [#allocation3], 0  ;;  %s900_s0 = inlined_call_operand.hbm [shape: f32[16,128], index: 0, kind: input, shape index: {}]   ;;  %s901_s1 = inlined_call_operand.hbm [shape: bf16[128,128], index: 1, kind: input, shape index: {}]   ;;  %s902_s2 = inlined_call_operand.vmem [shape: f32[1,128], index: 2, kind: input, shape index: {}]   ;;  %s903_s3 = inlined_call_operand.hbm [shape: bf16[128,128], index: 3, kind: input, shape index: {}]   ;;  %s904_s4 = inlined_call_operand.vmem [shape: f32[1,128], index: 4, kind: input, shape index: {}]   ;;  %s905_s5 = inlined_call_operand.hbm [shape: bf16[128,128], index: 5, kind: input, shape index: {}]   ;;  %s906_s6 = inlined_call_operand.vmem [shape: f32[1,128], index: 6, kind: input, shape index: {}]   ;;  %s907_s7 = inlined_call_operand.hbm [shape: f32[16,128], index: 7, kind: output, shape index: {}]  }
   0x1   :  { %13 = vsyncpa [#allocation6], 0 }
   0x2   :  { %14 = vsyncpa [#allocation9], 0 }
   0x3   :  { %15 = vsyncpa [#allocation4], 0  ;;  %s720_s24 = smov [#allocation5]   ;;  %s602_s28 = scalar_lea.hbm %s901_s1, 1024 }
   0x4   :  { %s33_s25 = sshll.u32 %s720_s24, 4  ;;  %p603_p0 = scmp.ne.s32.totalorder %s901_s1, %s602_s28  ;;  %s34_s25 = int_to_ptr.vmem [resolvable:$true] %s33_s25 }
   0x5   :  { %p606_p1 = scmp.lt.u32.totalorder %s602_s28, %s901_s1 }
   0x7   :  { %p608_p2 = pnand %p606_p1, %p603_p0 }
   0x9   :  { %611 = shalt.err (!%p608_p2)
}
   0xa   :  { %s612_s10 = scalar_lea.vmem %s34_s25, 1024  ;;  %p617_p4 = scmp.lt.s32.totalorder %s34_s25, %s34_s25 }
   0xb   :  { %p613_p3 = scmp.ne.s32.totalorder %s34_s25, %s612_s10  ;;  %p618_p5 = scmp.lt.s32.totalorder %s612_s10, %s612_s10 }
   0xd   :  { %p619_p6 = por %p618_p5, %p617_p4 }
   0xf   :  { %p620_p7 = pnand %p619_p6, %p613_p3 }
  0x11   :  { %623 = shalt.err (!%p620_p7)
}
  0x12   :  { %s721_s11 = smov 64   ;;  %s722_s12 = smov 4  }
  0x13   :  { %39 = dma.hbm_to_vmem [thread:$0]  %s901_s1, 1024, %s34_s25, [#allocation6], %s721_s11, %s721_s11, %s722_s12  }
  0x14   :  { %s723_s15 = smov [#allocation2]   ;;  %s624_s19 = scalar_lea.hbm %s900_s0, 256 }
  0x15   :  { %s21_s16 = sshll.u32 %s723_s15, 4  ;;  %p625_p8 = scmp.ne.s32.totalorder %s900_s0, %s624_s19  ;;  %s22_s16 = int_to_ptr.vmem [resolvable:$true] %s21_s16 }
  0x16   :  { %p628_p9 = scmp.lt.u32.totalorder %s624_s19, %s900_s0 }
  0x18   :  { %p630_p10 = pnand %p628_p9, %p625_p8 }
  0x1a   :  { %633 = shalt.err (!%p630_p10)
}
  0x1b   :  { %s634_s24 = scalar_lea.vmem %s22_s16, 256  ;;  %p639_p12 = scmp.lt.s32.totalorder %s22_s16, %s22_s16 }
  0x1c   :  { %p635_p11 = scmp.ne.s32.totalorder %s22_s16, %s634_s24  ;;  %p640_p13 = scmp.lt.s32.totalorder %s634_s24, %s634_s24 }
  0x1e   :  { %p641_p0 = por %p640_p13, %p639_p12 }
  0x20   :  { %p642_p1 = pnand %p641_p0, %p635_p11 }
  0x22   :  { %645 = shalt.err (!%p642_p1)
}
  0x23   :  { %s724_s1 = smov 128   ;;  %s725_s25 = smov 8  }
  0x24   :  { %27 = dma.hbm_to_vmem [thread:$0]  %s900_s0, 256, %s22_s16, [#allocation3], %s724_s1, %s724_s1, %s725_s25  }
  0x25   :  { %s726_s28 = smov [#allocation7]   ;;  %s727_s30 = smov [#allocation8]  }
  0x26   :  { %s47_s29 = sshll.u32 %s726_s28, 4  ;;  %s61_s8 = sshll.u32 %s727_s30, 4  ;;  %s48_s29 = int_to_ptr.vmem [resolvable:$true] %s47_s29  ;;  %s801_s8 = int_to_ptr.vmem [resolvable:$true] %s61_s8 }
  0x27   :  { %s646_s13 = scalar_lea.hbm %s903_s3, 1024 }
  0x28   :  { %p647_p2 = scmp.ne.s32.totalorder %s903_s3, %s646_s13  ;;  %p650_p3 = scmp.lt.u32.totalorder %s646_s13, %s903_s3 }
  0x2a   :  { %p652_p4 = pnand %p650_p3, %p647_p2 }
  0x2c   :  { %655 = shalt.err (!%p652_p4)
}
  0x2d   :  { %s656_s0 = scalar_lea.vmem %s48_s29, 1024  ;;  %p661_p6 = scmp.lt.s32.totalorder %s48_s29, %s48_s29 }
  0x2e   :  { %p657_p5 = scmp.ne.s32.totalorder %s48_s29, %s656_s0  ;;  %p662_p7 = scmp.lt.s32.totalorder %s656_s0, %s656_s0 }
  0x30   :  { %p663_p8 = por %p662_p7, %p661_p6 }
  0x32   :  { %p664_p9 = pnand %p663_p8, %p657_p5 }
  0x34   :  { %667 = shalt.err (!%p664_p9)
}
  0x35   :  { %53 = dma.hbm_to_vmem [thread:$0]  %s903_s3, 1024, %s48_s29, [#allocation6], %s721_s11, %s721_s11, %s722_s12  }
  0x36   :  { %s668_s22 = scalar_lea.hbm %s905_s5, 1024 }
  0x37   :  { %p669_p10 = scmp.ne.s32.totalorder %s905_s5, %s668_s22  ;;  %p672_p11 = scmp.lt.u32.totalorder %s668_s22, %s905_s5 }
  0x39   :  { %p674_p12 = pnand %p672_p11, %p669_p10 }
  0x3b   :  { %677 = shalt.err (!%p674_p12)
}
  0x3c   :  { %s678_s28 = scalar_lea.vmem %s801_s8, 1024  ;;  %p683_p0 = scmp.lt.s32.totalorder %s801_s8, %s801_s8 }
  0x3d   :  { %p679_p13 = scmp.ne.s32.totalorder %s801_s8, %s678_s28  ;;  %p684_p1 = scmp.lt.s32.totalorder %s678_s28, %s678_s28 }
  0x3f   :  { %p685_p2 = por %p684_p1, %p683_p0 }
  0x41   :  { %p686_p3 = pnand %p685_p2, %p679_p13 }
  0x43   :  { %689 = shalt.err (!%p686_p3)
}
  0x44   :  { %67 = dma.hbm_to_vmem [thread:$0]  %s905_s5, 1024, %s801_s8, [#allocation9], %s721_s11, %s721_s11, %s722_s12  }
  0x45   :  { %712 = dma.done.wait [#allocation3], 256  }
  0x46   :  { %713 = vsyncadd [#allocation3], 4294967040 }
  0x47   :  { %714 = dma.done.wait [#allocation6], 2048  }
  0x48   :  { %715 = vsyncadd [#allocation6], 4294965248 }
  0x49   :  { %716 = dma.done.wait [#allocation9], 1024  }
  0x4a   :  { %717 = vsyncadd [#allocation9], 4294966272  ;;  %v728_v0 = vmov 0.0   ;;  %vm729_vm0 = vmmov 0   ;;  %v578_v1 = vld [vmem:[#allocation5] sm:$0xff]   ;;  %v579_v2 = vld [vmem:[#allocation5 + $0x8] sm:$0xff]  }
  0x4b   :  { %507 = vmatprep.subr.bf16.mxu0 %v728_v0  ;;  %523 = vmatprep.mubr.msk.bf16.mxu0 %vm729_vm0, %v728_v0  ;;  %v580_v3 = vld [vmem:[#allocation5 + $0x10] sm:$0xff]   ;;  %v586_v4 = vld [vmem:[#allocation7] sm:$0xff]   ;;  %v581_v5 = vld [vmem:[#allocation5 + $0x18] sm:$0xff]  }
  0x4c   :  { %527 = vmatprep.subr.bf16.mxu1 %v728_v0  ;;  %543 = vmatprep.mubr.msk.bf16.mxu1 %vm729_vm0, %v728_v0  ;;  %v587_v6 = vld [vmem:[#allocation7 + $0x8] sm:$0xff]   ;;  %v582_v7 = vld [vmem:[#allocation5 + $0x20] sm:$0xff]   ;;  %v588_v8 = vld [vmem:[#allocation7 + $0x10] sm:$0xff]  }
  0x4d   :  { %508 = vmatpush3.bf16.msra.mxu0 %v578_v1  ;;  %528 = vmatpush3.bf16.msra.mxu1 %v586_v4  ;;  %v583_v9 = vld [vmem:[#allocation5 + $0x28] sm:$0xff]   ;;  %v589_v10 = vld [vmem:[#allocation7 + $0x18] sm:$0xff]   ;;  %v584_v11 = vld [vmem:[#allocation5 + $0x30] sm:$0xff]  }
  0x4e   :  { %509 = vmatprep.subr.bf16.mxu0 %v728_v0  ;;  %529 = vmatprep.subr.bf16.mxu1 %v728_v0  ;;  %v590_v12 = vld [vmem:[#allocation7 + $0x20] sm:$0xff]   ;;  %v585_v13 = vld [vmem:[#allocation5 + $0x38] sm:$0xff]   ;;  %v854_v14 = vld [vmem:[#allocation2] sm:$0xff] }
  0x4f   :  { %v856_v15 = vld [vmem:[#allocation2 + $0x8] sm:$0xff]  ;;  %v591_v16 = vld [vmem:[#allocation7 + $0x28] sm:$0xff]   ;;  %v592_v18 = vld [vmem:[#allocation7 + $0x30] sm:$0xff]  }
  0x50   :  { %v85_v17 = vpack.c.bf16 %v856_v15, %v854_v14  ;;  %v593_v19 = vld [vmem:[#allocation7 + $0x38] sm:$0xff]   ;;  %v594_v20 = vld [vmem:[#allocation8] sm:$0xff]   ;;  %v595_v21 = vld [vmem:[#allocation8 + $0x8] sm:$0xff]  }
  0x51   :  { %510 = vmatpush3.bf16.msra.mxu0 %v579_v2  ;;  %530 = vmatpush3.bf16.msra.mxu1 %v587_v6  ;;  %v596_v22 = vld [vmem:[#allocation8 + $0x10] sm:$0xff]   ;;  %v597_v23 = vld [vmem:[#allocation8 + $0x18] sm:$0xff]   ;;  %v598_v24 = vld [vmem:[#allocation8 + $0x20] sm:$0xff]  }
  0x52   :  { %511 = vmatprep.subr.bf16.mxu0 %v728_v0  ;;  %531 = vmatprep.subr.bf16.mxu1 %v728_v0  ;;  %v453_v25 = vld [vmem:[%s902_s2] ss:$0 sm:$0xff]  ;;  %v599_v33 = vld [vmem:[#allocation8 + $0x28] sm:$0xff]   ;;  %v601_v35 = vld [vmem:[#allocation8 + $0x38] sm:$0xff]  }
  0x53   :  { %v600_v34 = vld [vmem:[#allocation8 + $0x30] sm:$0xff]  }
  0x54   :  { %v470_v37 = vld [vmem:[%s904_s4] ss:$0 sm:$0xff]  ;;  %s730_s4 = smov [#allocation10]  }
  0x55   :  { %512 = vmatpush3.bf16.msra.mxu0 %v580_v3  ;;  %532 = vmatpush3.bf16.msra.mxu1 %v588_v8  ;;  %v471_v48 = vld [vmem:[%s906_s6] ss:$0 sm:$0xff]  ;;  %s439_s9 = sshll.u32 %s730_s4, 4  ;;  %s440_s9 = int_to_ptr.vmem [resolvable:$true] %s439_s9 }
  0x56   :  { %513 = vmatprep.subr.bf16.mxu0 %v728_v0  ;;  %533 = vmatprep.subr.bf16.mxu1 %v728_v0  ;;  %s690_s10 = scalar_lea.vmem %s440_s9, 256  ;;  %p695_p5 = scmp.lt.s32.totalorder %s440_s9, %s440_s9 }
  0x57   :  { %p691_p4 = scmp.ne.s32.totalorder %s440_s9, %s690_s10  ;;  %p696_p6 = scmp.lt.s32.totalorder %s690_s10, %s690_s10 }
  0x59   :  { %514 = vmatpush3.bf16.msra.mxu0 %v581_v5  ;;  %534 = vmatpush3.bf16.msra.mxu1 %v589_v10  ;;  %p697_p7 = por %p696_p6, %p695_p5 }
  0x5a   :  { %515 = vmatprep.subr.bf16.mxu0 %v728_v0  ;;  %535 = vmatprep.subr.bf16.mxu1 %v728_v0 }
  0x5b   :  { %p698_p8 = pnand %p697_p7, %p691_p4 }
  0x5d   :  { %516 = vmatpush3.bf16.msra.mxu0 %v582_v7  ;;  %536 = vmatpush3.bf16.msra.mxu1 %v590_v12 }
  0x5e   :  { %517 = vmatprep.subr.bf16.mxu0 %v728_v0  ;;  %537 = vmatprep.subr.bf16.mxu1 %v728_v0 }
  0x61   :  { %518 = vmatpush3.bf16.msra.mxu0 %v583_v9  ;;  %538 = vmatpush3.bf16.msra.mxu1 %v591_v16 }
  0x62   :  { %519 = vmatprep.subr.bf16.mxu0 %v728_v0  ;;  %539 = vmatprep.subr.bf16.mxu1 %v728_v0 }
  0x65   :  { %520 = vmatpush3.bf16.msra.mxu0 %v584_v11  ;;  %540 = vmatpush3.bf16.msra.mxu1 %v592_v18 }
  0x66   :  { %521 = vmatprep.subr.bf16.mxu0 %v728_v0  ;;  %541 = vmatprep.subr.bf16.mxu1 %v728_v0 }
  0x69   :  { %522 = vmatpush3.bf16.msra.mxu0 %v585_v13  ;;  %542 = vmatpush3.bf16.msra.mxu1 %v593_v19 }
  0x6a   :  { %547 = vmatprep.subr.bf16.mxu0 %v728_v0 }
  0x6c   :  { %524 = vmatmul.mubr.bf16.vlgmr.msra.gmra.mrb[0].mxu0 %v85_v17 }
  0x6d   :  { %563 = vmatprep.mubr.msk.bf16.mxu0 %vm729_vm0, %v728_v0  ;;  %548 = vmatpush3.bf16.msra.mxu0 %v594_v20 }
  0x6e   :  { %549 = vmatprep.subr.bf16.mxu0 %v728_v0 }
  0x71   :  { %550 = vmatpush3.bf16.msra.mxu0 %v595_v21 }
  0x72   :  { %551 = vmatprep.subr.bf16.mxu0 %v728_v0 }
  0x75   :  { %552 = vmatpush3.bf16.msra.mxu0 %v596_v22 }
  0x76   :  { %553 = vmatprep.subr.bf16.mxu0 %v728_v0 }
  0x79   :  { %554 = vmatpush3.bf16.msra.mxu0 %v597_v23 }
  0x7a   :  { %555 = vmatprep.subr.bf16.mxu0 %v728_v0 }
  0x7d   :  { %556 = vmatpush3.bf16.msra.mxu0 %v598_v24 }
  0x7e   :  { %557 = vmatprep.subr.bf16.mxu0 %v728_v0 }
  0x81   :  { %558 = vmatpush3.bf16.msra.mxu0 %v599_v33 }
  0x82   :  { %559 = vmatprep.subr.bf16.mxu0 %v728_v0 }
  0x85   :  { %560 = vmatpush3.bf16.msra.mxu0 %v600_v34 }
  0x86   :  { %561 = vmatprep.subr.bf16.mxu0 %v728_v0 }
  0x89   :  { %562 = vmatpush3.bf16.msra.mxu0 %v601_v35 }
 0x13f   :  { %v191_v26 = vpop.f32.mrb[0].mxu0 }
 0x140   :  { %v525_v27 = vpop.f32.mrb[1].mxu0  ;;  %v192_v29 = vadd.f32 %v453_v25, %v191_v26 }
 0x141   :  { %v194_v28 = vpop.f32.mrb[2].mxu0 }
 0x142   :  { %v195_v30 = vadd.f32 %v453_v25, %v194_v28  ;;  %v526_v31 = vpop.f32.mrb[3].mxu0 }
 0x144   :  { %v198_v32 = vpack.c.bf16 %v195_v30, %v192_v29 }
 0x146   :  { %544 = vmatmul.mubr.bf16.vlgmr.msra.gmra.mrb[0].mxu1 %v198_v32 }
 0x219   :  { %v297_v36 = vpop.f32.mrb[0].mxu1 }
 0x21a   :  { %v304_v38 = vadd.f32 %v297_v36, %v192_v29  ;;  %v545_v39 = vpop.f32.mrb[1].mxu1 }
 0x21b   :  { %v300_v40 = vpop.f32.mrb[2].mxu1 }
 0x21c   :  { %v313_v41 = vadd.f32 %v470_v37, %v304_v38  ;;  %v305_v42 = vadd.f32 %v300_v40, %v195_v30  ;;  %v546_v43 = vpop.f32.mrb[3].mxu1 }
 0x21e   :  { %v314_v44 = vadd.f32 %v470_v37, %v305_v42  ;;  %v315_v45 = vmax.f32 %v313_v41, 0.0 }
 0x220   :  { %v316_v46 = vmax.f32 %v314_v44, 0.0 }
 0x222   :  { %v317_v47 = vpack.c.bf16 %v316_v46, %v315_v45 }
 0x224   :  { %564 = vmatmul.mubr.bf16.vlgmr.msra.gmra.mrb[4].mxu0 %v317_v47 }
 0x2f7   :  { %v423_v49 = vpop.f32.mrb[4].mxu0 }
 0x2f8   :  { %v424_v50 = vadd.f32 %v471_v48, %v423_v49  ;;  %v565_v51 = vpop.f32.mrb[5].mxu0 }
 0x2f9   :  { %v426_v52 = vpop.f32.mrb[6].mxu0 }
 0x2fa   :  { %v430_v53 = vadd.f32 %v424_v50, %v854_v14  ;;  %v427_v54 = vadd.f32 %v471_v48, %v426_v52  ;;  %v566_v55 = vpop.f32.mrb[7].mxu0 }
 0x2fc   :  { %432 = vst [vmem:[#allocation10] sm:$0xff] %v430_v53  ;;  %v431_v56 = vadd.f32 %v427_v54, %v856_v15 }
 0x2fe   :  { %433 = vst [vmem:[#allocation10 + $0x8] sm:$0xff] %v431_v56 }
 0x2ff   :  { %701 = shalt.err (!%p698_p8)
}
 0x300   :  { %s702_s14 = scalar_lea.hbm %s907_s7, 256 }
 0x301   :  { %p703_p9 = scmp.ne.s32.totalorder %s907_s7, %s702_s14  ;;  %p706_p10 = scmp.lt.u32.totalorder %s702_s14, %s907_s7 }
 0x303   :  { %p708_p11 = pnand %p706_p10, %p703_p9 }
 0x305   :  { %711 = shalt.err (!%p708_p11)
}
 0x306   :  { %445 = dma.vmem_to_hbm [thread:$0]  %s440_s9, 256, %s907_s7, [#allocation4], %s724_s1, %s724_s1, %s725_s25  }
 0x307   :  { %718 = dma.done.wait [#allocation4], 256  }
 0x308   :  { %719 = vsyncadd [#allocation4], 4294967040 }
 0x309   :  { %449 = vsyncpa [#allocation3], 1 }
 0x30a   :  { %450 = vsyncpa [#allocation6], 1 }
 0x30b   :  { %451 = vsyncpa [#allocation9], 1 }
 0x30c   :  { %452 = vsyncpa [#allocation4], 1 }

// kernel: tpu_custom_call.1
= control target key start
LH: loop header
LB: loop body
LE: loop exit
PB: predicated region body
PF: predicated region fallthrough
CT: control target
= control target key end

     0   :  { %12 = vsyncpa [#allocation3], 0  ;;  %s900_s0 = inlined_call_operand.hbm [shape: f32[16,128], index: 0, kind: input, shape index: {}]   ;;  %s901_s1 = inlined_call_operand.hbm [shape: bf16[128,128], index: 1, kind: input, shape index: {}]   ;;  %s902_s2 = inlined_call_operand.vmem [shape: f32[1,128], index: 2, kind: input, shape index: {}]   ;;  %s903_s3 = inlined_call_operand.hbm [shape: bf16[128,128], index: 3, kind: input, shape index: {}]   ;;  %s904_s4 = inlined_call_operand.vmem [shape: f32[1,128], index: 4, kind: input, shape index: {}]   ;;  %s905_s5 = inlined_call_operand.hbm [shape: bf16[128,128], index: 5, kind: input, shape index: {}]   ;;  %s906_s6 = inlined_call_operand.vmem [shape: f32[1,128], index: 6, kind: input, shape index: {}]   ;;  %s907_s7 = inlined_call_operand.hbm [shape: f32[16,128], index: 7, kind: output, shape index: {}]  }
   0x1   :  { %13 = vsyncpa [#allocation6], 0 }
   0x2   :  { %14 = vsyncpa [#allocation9], 0 }
   0x3   :  { %15 = vsyncpa [#allocation4], 0  ;;  %s720_s24 = smov [#allocation5]   ;;  %s602_s28 = scalar_lea.hbm %s901_s1, 1024 }
   0x4   :  { %s33_s25 = sshll.u32 %s720_s24, 4  ;;  %p603_p0 = scmp.ne.s32.totalorder %s901_s1, %s602_s28  ;;  %s34_s25 = int_to_ptr.vmem [resolvable:$true] %s33_s25 }
   0x5   :  { %p606_p1 = scmp.lt.u32.totalorder %s602_s28, %s901_s1 }
   0x7   :  { %p608_p2 = pnand %p606_p1, %p603_p0 }
   0x9   :  { %611 = shalt.err (!%p608_p2)
}
   0xa   :  { %s612_s10 = scalar_lea.vmem %s34_s25, 1024  ;;  %p617_p4 = scmp.lt.s32.totalorder %s34_s25, %s34_s25 }
   0xb   :  { %p613_p3 = scmp.ne.s32.totalorder %s34_s25, %s612_s10  ;;  %p618_p5 = scmp.lt.s32.totalorder %s612_s10, %s612_s10 }
   0xd   :  { %p619_p6 = por %p618_p5, %p617_p4 }
   0xf   :  { %p620_p7 = pnand %p619_p6, %p613_p3 }
  0x11   :  { %623 = shalt.err (!%p620_p7)
}
  0x12   :  { %s721_s11 = smov 64   ;;  %s722_s12 = smov 4  }
  0x13   :  { %39 = dma.hbm_to_vmem [thread:$0]  %s901_s1, 1024, %s34_s25, [#allocation6], %s721_s11, %s721_s11, %s722_s12  }
  0x14   :  { %s723_s15 = smov [#allocation2]   ;;  %s624_s19 = scalar_lea.hbm %s900_s0, 256 }
  0x15   :  { %s21_s16 = sshll.u32 %s723_s15, 4  ;;  %p625_p8 = scmp.ne.s32.totalorder %s900_s0, %s624_s19  ;;  %s22_s16 = int_to_ptr.vmem [resolvable:$true] %s21_s16 }
  0x16   :  { %p628_p9 = scmp.lt.u32.totalorder %s624_s19, %s900_s0 }
  0x18   :  { %p630_p10 = pnand %p628_p9, %p625_p8 }
  0x1a   :  { %633 = shalt.err (!%p630_p10)
}
  0x1b   :  { %s634_s24 = scalar_lea.vmem %s22_s16, 256  ;;  %p639_p12 = scmp.lt.s32.totalorder %s22_s16, %s22_s16 }
  0x1c   :  { %p635_p11 = scmp.ne.s32.totalorder %s22_s16, %s634_s24  ;;  %p640_p13 = scmp.lt.s32.totalorder %s634_s24, %s634_s24 }
  0x1e   :  { %p641_p0 = por %p640_p13, %p639_p12 }
  0x20   :  { %p642_p1 = pnand %p641_p0, %p635_p11 }
  0x22   :  { %645 = shalt.err (!%p642_p1)
}
  0x23   :  { %s724_s1 = smov 128   ;;  %s725_s25 = smov 8  }
  0x24   :  { %27 = dma.hbm_to_vmem [thread:$0]  %s900_s0, 256, %s22_s16, [#allocation3], %s724_s1, %s724_s1, %s725_s25  }
  0x25   :  { %s726_s28 = smov [#allocation7]   ;;  %s727_s30 = smov [#allocation8]  }
  0x26   :  { %s47_s29 = sshll.u32 %s726_s28, 4  ;;  %s61_s8 = sshll.u32 %s727_s30, 4  ;;  %s48_s29 = int_to_ptr.vmem [resolvable:$true] %s47_s29  ;;  %s801_s8 = int_to_ptr.vmem [resolvable:$true] %s61_s8 }
  0x27   :  { %s646_s13 = scalar_lea.hbm %s903_s3, 1024 }
  0x28   :  { %p647_p2 = scmp.ne.s32.totalorder %s903_s3, %s646_s13  ;;  %p650_p3 = scmp.lt.u32.totalorder %s646_s13, %s903_s3 }
  0x2a   :  { %p652_p4 = pnand %p650_p3, %p647_p2 }
  0x2c   :  { %655 = shalt.err (!%p652_p4)
}
  0x2d   :  { %s656_s0 = scalar_lea.vmem %s48_s29, 1024  ;;  %p661_p6 = scmp.lt.s32.totalorder %s48_s29, %s48_s29 }
  0x2e   :  { %p657_p5 = scmp.ne.s32.totalorder %s48_s29, %s656_s0  ;;  %p662_p7 = scmp.lt.s32.totalorder %s656_s0, %s656_s0 }
  0x30   :  { %p663_p8 = por %p662_p7, %p661_p6 }
  0x32   :  { %p664_p9 = pnand %p663_p8, %p657_p5 }
  0x34   :  { %667 = shalt.err (!%p664_p9)
}
  0x35   :  { %53 = dma.hbm_to_vmem [thread:$0]  %s903_s3, 1024, %s48_s29, [#allocation6], %s721_s11, %s721_s11, %s722_s12  }
  0x36   :  { %s668_s22 = scalar_lea.hbm %s905_s5, 1024 }
  0x37   :  { %p669_p10 = scmp.ne.s32.totalorder %s905_s5, %s668_s22  ;;  %p672_p11 = scmp.lt.u32.totalorder %s668_s22, %s905_s5 }
  0x39   :  { %p674_p12 = pnand %p672_p11, %p669_p10 }
  0x3b   :  { %677 = shalt.err (!%p674_p12)
}
  0x3c   :  { %s678_s28 = scalar_lea.vmem %s801_s8, 1024  ;;  %p683_p0 = scmp.lt.s32.totalorder %s801_s8, %s801_s8 }
  0x3d   :  { %p679_p13 = scmp.ne.s32.totalorder %s801_s8, %s678_s28  ;;  %p684_p1 = scmp.lt.s32.totalorder %s678_s28, %s678_s28 }
  0x3f   :  { %p685_p2 = por %p684_p1, %p683_p0 }
  0x41   :  { %p686_p3 = pnand %p685_p2, %p679_p13 }
  0x43   :  { %689 = shalt.err (!%p686_p3)
}
  0x44   :  { %67 = dma.hbm_to_vmem [thread:$0]  %s905_s5, 1024, %s801_s8, [#allocation9], %s721_s11, %s721_s11, %s722_s12  }
  0x45   :  { %712 = dma.done.wait [#allocation3], 256  }
  0x46   :  { %713 = vsyncadd [#allocation3], 4294967040 }
  0x47   :  { %714 = dma.done.wait [#allocation6], 2048  }
  0x48   :  { %715 = vsyncadd [#allocation6], 4294965248 }
  0x49   :  { %716 = dma.done.wait [#allocation9], 1024  }
  0x4a   :  { %717 = vsyncadd [#allocation9], 4294966272  ;;  %v728_v0 = vmov 0.0   ;;  %vm729_vm0 = vmmov 0   ;;  %v578_v1 = vld [vmem:[#allocation5] sm:$0xff]   ;;  %v579_v2 = vld [vmem:[#allocation5 + $0x8] sm:$0xff]  }
  0x4b   :  { %507 = vmatprep.subr.bf16.mxu0 %v728_v0  ;;  %523 = vmatprep.mubr.msk.bf16.mxu0 %vm729_vm0, %v728_v0  ;;  %v580_v3 = vld [vmem:[#allocation5 + $0x10] sm:$0xff]   ;;  %v586_v4 = vld [vmem:[#allocation7] sm:$0xff]   ;;  %v581_v5 = vld [vmem:[#allocation5 + $0x18] sm:$0xff]  }
  0x4c   :  { %527 = vmatprep.subr.bf16.mxu1 %v728_v0  ;;  %543 = vmatprep.mubr.msk.bf16.mxu1 %vm729_vm0, %v728_v0  ;;  %v587_v6 = vld [vmem:[#allocation7 + $0x8] sm:$0xff]   ;;  %v582_v7 = vld [vmem:[#allocation5 + $0x20] sm:$0xff]   ;;  %v588_v8 = vld [vmem:[#allocation7 + $0x10] sm:$0xff]  }
  0x4d   :  { %508 = vmatpush3.bf16.msra.mxu0 %v578_v1  ;;  %528 = vmatpush3.bf16.msra.mxu1 %v586_v4  ;;  %v583_v9 = vld [vmem:[#allocation5 + $0x28] sm:$0xff]   ;;  %v589_v10 = vld [vmem:[#allocation7 + $0x18] sm:$0xff]   ;;  %v584_v11 = vld [vmem:[#allocation5 + $0x30] sm:$0xff]  }
  0x4e   :  { %509 = vmatprep.subr.bf16.mxu0 %v728_v0  ;;  %529 = vmatprep.subr.bf16.mxu1 %v728_v0  ;;  %v590_v12 = vld [vmem:[#allocation7 + $0x20] sm:$0xff]   ;;  %v585_v13 = vld [vmem:[#allocation5 + $0x38] sm:$0xff]   ;;  %v854_v14 = vld [vmem:[#allocation2] sm:$0xff] }
  0x4f   :  { %v856_v15 = vld [vmem:[#allocation2 + $0x8] sm:$0xff]  ;;  %v591_v16 = vld [vmem:[#allocation7 + $0x28] sm:$0xff]   ;;  %v592_v18 = vld [vmem:[#allocation7 + $0x30] sm:$0xff]  }
  0x50   :  { %v85_v17 = vpack.c.bf16 %v856_v15, %v854_v14  ;;  %v593_v19 = vld [vmem:[#allocation7 + $0x38] sm:$0xff]   ;;  %v594_v20 = vld [vmem:[#allocation8] sm:$0xff]   ;;  %v595_v21 = vld [vmem:[#allocation8 + $0x8] sm:$0xff]  }
  0x51   :  { %510 = vmatpush3.bf16.msra.mxu0 %v579_v2  ;;  %530 = vmatpush3.bf16.msra.mxu1 %v587_v6  ;;  %v596_v22 = vld [vmem:[#allocation8 + $0x10] sm:$0xff]   ;;  %v597_v23 = vld [vmem:[#allocation8 + $0x18] sm:$0xff]   ;;  %v598_v24 = vld [vmem:[#allocation8 + $0x20] sm:$0xff]  }
  0x52   :  { %511 = vmatprep.subr.bf16.mxu0 %v728_v0  ;;  %531 = vmatprep.subr.bf16.mxu1 %v728_v0  ;;  %v453_v25 = vld [vmem:[%s902_s2] ss:$0 sm:$0xff]  ;;  %v599_v33 = vld [vmem:[#allocation8 + $0x28] sm:$0xff]   ;;  %v601_v35 = vld [vmem:[#allocation8 + $0x38] sm:$0xff]  }
  0x53   :  { %v600_v34 = vld [vmem:[#allocation8 + $0x30] sm:$0xff]  }
  0x54   :  { %v470_v37 = vld [vmem:[%s904_s4] ss:$0 sm:$0xff]  ;;  %s730_s4 = smov [#allocation10]  }
  0x55   :  { %512 = vmatpush3.bf16.msra.mxu0 %v580_v3  ;;  %532 = vmatpush3.bf16.msra.mxu1 %v588_v8  ;;  %v471_v48 = vld [vmem:[%s906_s6] ss:$0 sm:$0xff]  ;;  %s439_s9 = sshll.u32 %s730_s4, 4  ;;  %s440_s9 = int_to_ptr.vmem [resolvable:$true] %s439_s9 }
  0x56   :  { %513 = vmatprep.subr.bf16.mxu0 %v728_v0  ;;  %533 = vmatprep.subr.bf16.mxu1 %v728_v0  ;;  %s690_s10 = scalar_lea.vmem %s440_s9, 256  ;;  %p695_p5 = scmp.lt.s32.totalorder %s440_s9, %s440_s9 }
  0x57   :  { %p691_p4 = scmp.ne.s32.totalorder %s440_s9, %s690_s10  ;;  %p696_p6 = scmp.lt.s32.totalorder %s690_s10, %s690_s10 }
  0x59   :  { %514 = vmatpush3.bf16.msra.mxu0 %v581_v5  ;;  %534 = vmatpush3.bf16.msra.mxu1 %v589_v10  ;;  %p697_p7 = por %p696_p6, %p695_p5 }
  0x5a   :  { %515 = vmatprep.subr.bf16.mxu0 %v728_v0  ;;  %535 = vmatprep.subr.bf16.mxu1 %v728_v0 }
  0x5b   :  { %p698_p8 = pnand %p697_p7, %p691_p4 }
  0x5d   :  { %516 = vmatpush3.bf16.msra.mxu0 %v582_v7  ;;  %536 = vmatpush3.bf16.msra.mxu1 %v590_v12 }
  0x5e   :  { %517 = vmatprep.subr.bf16.mxu0 %v728_v0  ;;  %537 = vmatprep.subr.bf16.mxu1 %v728_v0 }
  0x61   :  { %518 = vmatpush3.bf16.msra.mxu0 %v583_v9  ;;  %538 = vmatpush3.bf16.msra.mxu1 %v591_v16 }
  0x62   :  { %519 = vmatprep.subr.bf16.mxu0 %v728_v0  ;;  %539 = vmatprep.subr.bf16.mxu1 %v728_v0 }
  0x65   :  { %520 = vmatpush3.bf16.msra.mxu0 %v584_v11  ;;  %540 = vmatpush3.bf16.msra.mxu1 %v592_v18 }
  0x66   :  { %521 = vmatprep.subr.bf16.mxu0 %v728_v0  ;;  %541 = vmatprep.subr.bf16.mxu1 %v728_v0 }
  0x69   :  { %522 = vmatpush3.bf16.msra.mxu0 %v585_v13  ;;  %542 = vmatpush3.bf16.msra.mxu1 %v593_v19 }
  0x6a   :  { %547 = vmatprep.subr.bf16.mxu0 %v728_v0 }
  0x6c   :  { %524 = vmatmul.mubr.bf16.vlgmr.msra.gmra.mrb[0].mxu0 %v85_v17 }
  0x6d   :  { %563 = vmatprep.mubr.msk.bf16.mxu0 %vm729_vm0, %v728_v0  ;;  %548 = vmatpush3.bf16.msra.mxu0 %v594_v20 }
  0x6e   :  { %549 = vmatprep.subr.bf16.mxu0 %v728_v0 }
  0x71   :  { %550 = vmatpush3.bf16.msra.mxu0 %v595_v21 }
  0x72   :  { %551 = vmatprep.subr.bf16.mxu0 %v728_v0 }
  0x75   :  { %552 = vmatpush3.bf16.msra.mxu0 %v596_v22 }
  0x76   :  { %553 = vmatprep.subr.bf16.mxu0 %v728_v0 }
  0x79   :  { %554 = vmatpush3.bf16.msra.mxu0 %v597_v23 }
  0x7a   :  { %555 = vmatprep.subr.bf16.mxu0 %v728_v0 }
  0x7d   :  { %556 = vmatpush3.bf16.msra.mxu0 %v598_v24 }
  0x7e   :  { %557 = vmatprep.subr.bf16.mxu0 %v728_v0 }
  0x81   :  { %558 = vmatpush3.bf16.msra.mxu0 %v599_v33 }
  0x82   :  { %559 = vmatprep.subr.bf16.mxu0 %v728_v0 }
  0x85   :  { %560 = vmatpush3.bf16.msra.mxu0 %v600_v34 }
  0x86   :  { %561 = vmatprep.subr.bf16.mxu0 %v728_v0 }
  0x89   :  { %562 = vmatpush3.bf16.msra.mxu0 %v601_v35 }
 0x13f   :  { %v191_v26 = vpop.f32.mrb[0].mxu0 }
 0x140   :  { %v525_v27 = vpop.f32.mrb[1].mxu0  ;;  %v192_v29 = vadd.f32 %v453_v25, %v191_v26 }
 0x141   :  { %v194_v28 = vpop.f32.mrb[2].mxu0 }
 0x142   :  { %v195_v30 = vadd.f32 %v453_v25, %v194_v28  ;;  %v526_v31 = vpop.f32.mrb[3].mxu0 }
 0x144   :  { %v198_v32 = vpack.c.bf16 %v195_v30, %v192_v29 }
 0x146   :  { %544 = vmatmul.mubr.bf16.vlgmr.msra.gmra.mrb[0].mxu1 %v198_v32 }
 0x219   :  { %v297_v36 = vpop.f32.mrb[0].mxu1 }
 0x21a   :  { %v304_v38 = vadd.f32 %v297_v36, %v192_v29  ;;  %v545_v39 = vpop.f32.mrb[1].mxu1 }
 0x21b   :  { %v300_v40 = vpop.f32.mrb[2].mxu1 }
 0x21c   :  { %v313_v41 = vadd.f32 %v470_v37, %v304_v38  ;;  %v305_v42 = vadd.f32 %v300_v40, %v195_v30  ;;  %v546_v43 = vpop.f32.mrb[3].mxu1 }
 0x21e   :  { %v314_v44 = vadd.f32 %v470_v37, %v305_v42  ;;  %v315_v45 = vmax.f32 %v313_v41, 0.0 }
 0x220   :  { %v316_v46 = vmax.f32 %v314_v44, 0.0 }
 0x222   :  { %v317_v47 = vpack.c.bf16 %v316_v46, %v315_v45 }
 0x224   :  { %564 = vmatmul.mubr.bf16.vlgmr.msra.gmra.mrb[4].mxu0 %v317_v47 }
 0x2f7   :  { %v423_v49 = vpop.f32.mrb[4].mxu0 }
 0x2f8   :  { %v424_v50 = vadd.f32 %v471_v48, %v423_v49  ;;  %v565_v51 = vpop.f32.mrb[5].mxu0 }
 0x2f9   :  { %v426_v52 = vpop.f32.mrb[6].mxu0 }
 0x2fa   :  { %v430_v53 = vadd.f32 %v424_v50, %v854_v14  ;;  %v427_v54 = vadd.f32 %v471_v48, %v426_v52  ;;  %v566_v55 = vpop.f32.mrb[7].mxu0 }
 0x2fc   :  { %432 = vst [vmem:[#allocation10] sm:$0xff] %v430_v53  ;;  %v431_v56 = vadd.f32 %v427_v54, %v856_v15 }
 0x2fe   :  { %433 = vst [vmem:[#allocation10 + $0x8] sm:$0xff] %v431_v56 }
 0x2ff   :  { %701 = shalt.err (!%p698_p8)
}
 0x300   :  { %s702_s14 = scalar_lea.hbm %s907_s7, 256 }
 0x301   :  { %p703_p9 = scmp.ne.s32.totalorder %s907_s7, %s702_s14  ;;  %p706_p10 = scmp.lt.u32.totalorder %s702_s14, %s907_s7 }
 0x303   :  { %p708_p11 = pnand %p706_p10, %p703_p9 }
 0x305   :  { %711 = shalt.err (!%p708_p11)
}
 0x306   :  { %445 = dma.vmem_to_hbm [thread:$0]  %s440_s9, 256, %s907_s7, [#allocation4], %s724_s1, %s724_s1, %s725_s25  }
 0x307   :  { %718 = dma.done.wait [#allocation4], 256  }
 0x308   :  { %719 = vsyncadd [#allocation4], 4294967040 }
 0x309   :  { %449 = vsyncpa [#allocation3], 1 }
 0x30a   :  { %450 = vsyncpa [#allocation6], 1 }
 0x30b   :  { %451 = vsyncpa [#allocation9], 1 }
 0x30c   :  { %452 = vsyncpa [#allocation4], 1 }

</bundles_post_ra>
